<compile_context>
chip_gen: v7x
topology: tpu7x:2x2x1
jax: 0.10.0
libtpu: 0.0.40
codegen_flags: <defaults>
</compile_context>

<pallas_src>
import functools

import jax
import jax.numpy as jnp
from jax.experimental import pallas as pl
from jax.experimental.pallas import tpu as pltpu

INPUT_CHANNELS = 1
SEQ_LEN = 4                  # INPUT_SEQ_LEN_CNN_TRANSFORMER
HIDDEN_DIM = 128
OUTPUT_DIM = 2
KERNEL_SIZE = 3
C1 = HIDDEN_DIM // 2         # conv1 output channels = 64
POOLED_LEN = SEQ_LEN // 2    # 2
PAD_OUT = 128                # lane-dense FC width used only inside VMEM
C1PACK = 2 * C1              # 128 = [p0 | p1] packed lanes after pooling
C2PACK = 2 * HIDDEN_DIM      # 256 = [z0 | z1] packed lanes after conv2
W1P_COLS = SEQ_LEN * C1      # 256 = conv1 packed RHS columns [h0|h2||h1|h3]


def _round_up(n, m):
    return ((n + m - 1) // m) * m


def _cdiv(a, b):
    return (a + b - 1) // b


def _cnn1d_kernel(x_ref, w1_ref, b1_ref, w2_ref, b2_ref, wfc_ref, bfc_ref, o_ref):
    """One batch tile of the RotationCNN1D forward pass.

    x_ref  : (TB, 4)      f32   input (C_in == 1 squeezed)
    w1_ref : (4, 256)     f32   conv1 taps packed as columns [h0 | h2 || h1 | h3]
    b1_ref : (1, 128)     f32   [conv1.bias | conv1.bias]
    w2_ref : (128, 256)   bf16  conv2 block matrix [[w2k1, w2k0], [w2k2, w2k1]]
    b2_ref : (1, 256)     f32   [conv2.bias | conv2.bias]
    wfc_ref: (256, 128)   bf16  fc weight, K packed [t=0 ; t=1], N padded 2 -> 128
    bfc_ref: (1, 128)     f32   fc.bias padded 2 -> 128
    o_ref  : (TB, 2)      f32   logits (narrow output; no padded HBM writeback)
    """
    # conv1 (k=3, pad=1, C_in=1) over the length-4 sequence as one MXU matmul.
    h = jnp.dot(x_ref[...], w1_ref[...], preferred_element_type=jnp.float32)  # (TB, 256)

    # MaxPool1d(2): columns are ordered [h0 | h2 || h1 | h3], so pooling is a
    # single max over the two 128-lane halves.  conv1 bias + ReLU hoisted here.
    p = jnp.maximum(jnp.maximum(h[:, :C1PACK], h[:, C1PACK:]) + b1_ref[...], 0.0)
    p = p.astype(jnp.bfloat16)                                  # (TB, 128) = [p0 | p1]

    # conv2 (k=3, pad=1) over the 2 pooled positions fused into one K=128 matmul.
    z = jnp.dot(p, w2_ref[...], preferred_element_type=jnp.float32)           # (TB, 256)
    z = jnp.maximum(z + b2_ref[...], 0.0).astype(jnp.bfloat16)                # [z0 | z1]

    # Flatten (channel-major .view order, j = 2*c + t) + Linear as one K=256 matmul.
    y = jnp.dot(z, wfc_ref[...], preferred_element_type=jnp.float32) + bfc_ref[...]
    o_ref[...] = y[:, :OUTPUT_DIM].astype(o_ref.dtype)


def init_torch_like_params(key):
    """PyTorch-layout parameters with nn.Conv1d / nn.Linear default-style init."""
    def uinit(k, shape, fan_in):
        bound = 1.0 / jnp.sqrt(jnp.float32(fan_in))
        return jax.random.uniform(k, shape, jnp.float32, -bound, bound)

    ks = jax.random.split(key, 6)
    fan1 = INPUT_CHANNELS * KERNEL_SIZE
    fan2 = C1 * KERNEL_SIZE
    fanf = HIDDEN_DIM * POOLED_LEN
    return {
        "conv1_w": uinit(ks[0], (C1, INPUT_CHANNELS, KERNEL_SIZE), fan1),
        "conv1_b": uinit(ks[1], (C1,), fan1),
        "conv2_w": uinit(ks[2], (HIDDEN_DIM, C1, KERNEL_SIZE), fan2),
        "conv2_b": uinit(ks[3], (HIDDEN_DIM,), fan2),
        "fc_w": uinit(ks[4], (OUTPUT_DIM, fanf), fanf),
        "fc_b": uinit(ks[5], (OUTPUT_DIM,), fanf),
    }


def prepare_kernel_params(p):
    """Repack PyTorch-layout weights into the kernel's fused layout (once, outside)."""
    # --- conv1: one (4, 256) matmul RHS.  Column blocks [W1_t0 | W1_t2 || W1_t1 | W1_t3]
    # so max over the two 128-lane halves of the result implements MaxPool1d(2).
    w1_kc = jnp.transpose(p["conv1_w"][:, 0, :], (1, 0))          # (3, 64)  [k, c]

    def tap_matrix(t):
        m = jnp.zeros((SEQ_LEN, C1), jnp.float32)
        for k in range(KERNEL_SIZE):
            s = t + k - 1                                          # zero-padded edges
            if 0 <= s < SEQ_LEN:
                m = m.at[s, :].set(w1_kc[k])
        return m

    w1p = jnp.concatenate(
        [tap_matrix(0), tap_matrix(2), tap_matrix(1), tap_matrix(3)], axis=1)    # (4, 256)
    b1p = jnp.concatenate([p["conv1_b"], p["conv1_b"]]).reshape(1, C1PACK)       # (1, 128)

    # --- conv2: 2x2 block matrix so conv over the 2 pooled positions is one
    # K=128 matmul with LHS [p0 | p1] producing [z0 | z1].
    w2 = jnp.transpose(p["conv2_w"], (2, 1, 0))                   # (3, 64, 128)  [k, ci, co]
    w2p = jnp.concatenate(
        [jnp.concatenate([w2[1], w2[0]], axis=1),
         jnp.concatenate([w2[2], w2[1]], axis=1)], axis=0).astype(jnp.bfloat16)  # (128, 256)
    b2p = jnp.concatenate([p["conv2_b"], p["conv2_b"]]).reshape(1, C2PACK)       # (1, 256)

    # --- fc: flatten index j = 2*c + t -> wfc[t, c, o]; pack K as [t=0 ; t=1].
    wfc = jnp.transpose(p["fc_w"].reshape(OUTPUT_DIM, HIDDEN_DIM, POOLED_LEN),
                        (2, 1, 0))                                # (2, 128, 2)  [t, c, o]
    wfcp = jnp.concatenate([wfc[0], wfc[1]], axis=0)              # (256, 2)
    wfcp = jnp.pad(wfcp, ((0, 0), (0, PAD_OUT - OUTPUT_DIM))).astype(jnp.bfloat16)  # (256,128)
    bfcp = jnp.pad(p["fc_b"], (0, PAD_OUT - OUTPUT_DIM)).reshape(1, PAD_OUT)

    return {"w1": w1p, "b1": b1p, "w2": w2p, "b2": b2p, "wfc": wfcp, "bfc": bfcp}


@functools.partial(jax.jit, static_argnames=("tb",))
def rotation_cnn1d_forward(x, kp, *, tb=1024):
    """x: (B, 1, SEQ_LEN) float32 (same layout as the PyTorch module input)."""
    B = x.shape[0]
    x2 = x.reshape(B, SEQ_LEN).astype(jnp.float32)                # squeeze C_in == 1

    min_tile = 8
    b_pad = _round_up(max(B, 1), min_tile)
    tb_eff = min(tb, b_pad)
    # v7x megacore: keep the "parallel" grid >= 2 steps whenever the batch allows,
    # so both TensorCores get work.
    if b_pad >= 2 * min_tile:
        tb_eff = min(tb_eff, _round_up(_cdiv(b_pad, 2), min_tile))
    b_pad = _round_up(b_pad, tb_eff)
    if b_pad != B:
        x2 = jnp.pad(x2, ((0, b_pad - B), (0, 0)))

    out = pl.pallas_call(
        _cnn1d_kernel,
        out_shape=jax.ShapeDtypeStruct((b_pad, OUTPUT_DIM), jnp.float32),
        grid=(b_pad // tb_eff,),
        in_specs=[
            pl.BlockSpec((tb_eff, SEQ_LEN), lambda i: (i, 0)),       # x tile
            pl.BlockSpec((SEQ_LEN, W1P_COLS), lambda i: (0, 0)),     # w1 packed (resident)
            pl.BlockSpec((1, C1PACK), lambda i: (0, 0)),             # b1 packed
            pl.BlockSpec((C1PACK, C2PACK), lambda i: (0, 0)),        # w2 packed
            pl.BlockSpec((1, C2PACK), lambda i: (0, 0)),             # b2 packed
            pl.BlockSpec((C2PACK, PAD_OUT), lambda i: (0, 0)),       # fc weight packed
            pl.BlockSpec((1, PAD_OUT), lambda i: (0, 0)),            # fc bias padded
        ],
        out_specs=pl.BlockSpec((tb_eff, OUTPUT_DIM), lambda i: (i, 0)),  # narrow output
        compiler_params=pltpu.CompilerParams(
            dimension_semantics=("parallel",),
            vmem_limit_bytes=32 * 1024 * 1024,
        ),
    )(x2, kp["w1"], kp["b1"], kp["w2"], kp["b2"], kp["wfc"], kp["bfc"])

    return out[:B]


def reference_forward(x, p):
    """Pure-JAX f32 reference mirroring the PyTorch module exactly."""
    h = jax.lax.conv_general_dilated(
        x, p["conv1_w"], window_strides=(1,), padding=((1, 1),),
        dimension_numbers=("NCH", "OIH", "NCH"))
    h = jnp.maximum(h + p["conv1_b"][None, :, None], 0.0)
    b, c, l = h.shape
    h = h.reshape(b, c, l // 2, 2).max(axis=-1)                   # MaxPool1d(2)
    h = jax.lax.conv_general_dilated(
        h, p["conv2_w"], window_strides=(1,), padding=((1, 1),),
        dimension_numbers=("NCH", "OIH", "NCH"))
    h = jnp.maximum(h + p["conv2_b"][None, :, None], 0.0)
    flat = h.reshape(h.shape[0], -1)                              # (B, 256), channel-major
    return flat @ p["fc_w"].T + p["fc_b"]


if __name__ == "__main__":
    key = jax.random.PRNGKey(0)
    k_params, k_x = jax.random.split(key)

    pt_params = init_torch_like_params(k_params)
    kparams = prepare_kernel_params(pt_params)

    B = 8
    x = jax.random.normal(k_x, (B, INPUT_CHANNELS, SEQ_LEN), jnp.float32)

    out = jax.block_until_ready(rotation_cnn1d_forward(x, kparams))
    ref = reference_forward(x, pt_params)

    assert out.shape == (B, OUTPUT_DIM)
    # bf16 MXU operands (f32 accumulation) vs a pure-f32 reference -> loose tolerance.
    assert jnp.allclose(out, ref, atol=5e-2, rtol=5e-2), float(jnp.max(jnp.abs(out - ref)))

    print("KERNEL_OK")
</pallas_src>

<mosaic_0001>
module attributes {stable_mosaic.version = 11 : i64} {
  func.func @_cnn1d_kernel(%arg0: i32, %arg1: memref<8x4xf32, #tpu.memory_space<vmem>>, %arg2: memref<4x256xf32, #tpu.memory_space<vmem>>, %arg3: memref<1x128xf32, #tpu.memory_space<vmem>>, %arg4: memref<128x256xbf16, #tpu.memory_space<vmem>>, %arg5: memref<1x256xf32, #tpu.memory_space<vmem>>, %arg6: memref<256x128xbf16, #tpu.memory_space<vmem>>, %arg7: memref<1x128xf32, #tpu.memory_space<vmem>>, %arg8: memref<8x2xf32, #tpu.memory_space<vmem>>) attributes {dimension_semantics = [#tpu.dimension_semantics<parallel>], iteration_bounds = array<i64: 1>, scalar_prefetch = 0 : i64, scratch_operands = 0 : i64, tpu.core_type = #tpu.core_type<tc>, window_params = [{transform_indices = @transform_0, window_bounds = array<i64: 8, 4>}, {pipeline_mode = #tpu.pipeline_mode<synchronous>, transform_indices = @transform_1, window_bounds = array<i64: 4, 256>}, {pipeline_mode = #tpu.pipeline_mode<synchronous>, transform_indices = @transform_2, window_bounds = array<i64: 1, 128>}, {pipeline_mode = #tpu.pipeline_mode<synchronous>, transform_indices = @transform_3, window_bounds = array<i64: 128, 256>}, {pipeline_mode = #tpu.pipeline_mode<synchronous>, transform_indices = @transform_4, window_bounds = array<i64: 1, 256>}, {pipeline_mode = #tpu.pipeline_mode<synchronous>, transform_indices = @transform_5, window_bounds = array<i64: 256, 128>}, {pipeline_mode = #tpu.pipeline_mode<synchronous>, transform_indices = @transform_6, window_bounds = array<i64: 1, 128>}, {transform_indices = @transform_7, window_bounds = array<i64: 8, 2>}]} {
    %c0 = arith.constant 0 : index
    %c0_0 = arith.constant 0 : index
    %0 = vector.load %arg1[%c0, %c0_0] : memref<8x4xf32, #tpu.memory_space<vmem>>, vector<8x4xf32>
    %c0_1 = arith.constant 0 : index
    %c0_2 = arith.constant 0 : index
    %1 = vector.load %arg2[%c0_1, %c0_2] : memref<4x256xf32, #tpu.memory_space<vmem>>, vector<4x256xf32>
    %cst = arith.constant dense<0.000000e+00> : vector<8x256xf32>
    %2 = tpu.matmul %0, %1, %cst {dimension_numbers = #tpu.dot_dimension_numbers<[1], [0], [0], [1], [0, 0, 1, 1], [], []>} : vector<8x4xf32>, vector<4x256xf32>, vector<8x256xf32> -> vector<8x256xf32>
    %3 = vector.extract_strided_slice %2 {offsets = [0, 0], sizes = [8, 128], strides = [1, 1]} : vector<8x256xf32> to vector<8x128xf32>
    %4 = vector.extract_strided_slice %2 {offsets = [0, 128], sizes = [8, 128], strides = [1, 1]} : vector<8x256xf32> to vector<8x128xf32>
    %5 = arith.maximumf %3, %4 : vector<8x128xf32>
    %c0_3 = arith.constant 0 : index
    %c0_4 = arith.constant 0 : index
    %6 = vector.load %arg3[%c0_3, %c0_4] : memref<1x128xf32, #tpu.memory_space<vmem>>, vector<1x128xf32>
    %7 = vector.broadcast %6 : vector<1x128xf32> to vector<8x128xf32>
    %8 = arith.addf %5, %7 : vector<8x128xf32>
    %cst_5 = arith.constant 0.000000e+00 : f32
    %9 = vector.broadcast %cst_5 : f32 to vector<8x128xf32>
    %10 = arith.maximumf %8, %9 : vector<8x128xf32>
    %11 = arith.truncf %10 : vector<8x128xf32> to vector<8x128xbf16>
    %c0_6 = arith.constant 0 : index
    %c0_7 = arith.constant 0 : index
    %12 = vector.load %arg4[%c0_6, %c0_7] : memref<128x256xbf16, #tpu.memory_space<vmem>>, vector<128x256xbf16>
    %cst_8 = arith.constant dense<0.000000e+00> : vector<8x256xf32>
    %13 = tpu.matmul %11, %12, %cst_8 {dimension_numbers = #tpu.dot_dimension_numbers<[1], [0], [0], [1], [0, 0, 1, 1], [], []>} : vector<8x128xbf16>, vector<128x256xbf16>, vector<8x256xf32> -> vector<8x256xf32>
    %c0_9 = arith.constant 0 : index
    %c0_10 = arith.constant 0 : index
    %14 = vector.load %arg5[%c0_9, %c0_10] : memref<1x256xf32, #tpu.memory_space<vmem>>, vector<1x256xf32>
    %15 = vector.broadcast %14 : vector<1x256xf32> to vector<8x256xf32>
    %16 = arith.addf %13, %15 : vector<8x256xf32>
    %cst_11 = arith.constant 0.000000e+00 : f32
    %17 = vector.broadcast %cst_11 : f32 to vector<8x256xf32>
    %18 = arith.maximumf %16, %17 : vector<8x256xf32>
    %19 = arith.truncf %18 : vector<8x256xf32> to vector<8x256xbf16>
    %c0_12 = arith.constant 0 : index
    %c0_13 = arith.constant 0 : index
    %20 = vector.load %arg6[%c0_12, %c0_13] : memref<256x128xbf16, #tpu.memory_space<vmem>>, vector<256x128xbf16>
    %cst_14 = arith.constant dense<0.000000e+00> : vector<8x128xf32>
    %21 = tpu.matmul %19, %20, %cst_14 {dimension_numbers = #tpu.dot_dimension_numbers<[1], [0], [0], [1], [0, 0, 1, 1], [], []>} : vector<8x256xbf16>, vector<256x128xbf16>, vector<8x128xf32> -> vector<8x128xf32>
    %c0_15 = arith.constant 0 : index
    %c0_16 = arith.constant 0 : index
    %22 = vector.load %arg7[%c0_15, %c0_16] : memref<1x128xf32, #tpu.memory_space<vmem>>, vector<1x128xf32>
    %23 = vector.broadcast %22 : vector<1x128xf32> to vector<8x128xf32>
    %24 = arith.addf %21, %23 : vector<8x128xf32>
    %25 = vector.extract_strided_slice %24 {offsets = [0, 0], sizes = [8, 2], strides = [1, 1]} : vector<8x128xf32> to vector<8x2xf32>
    %c0_17 = arith.constant 0 : index
    %c0_18 = arith.constant 0 : index
    %26 = vector.load %arg8[%c0_17, %c0_18] : memref<8x2xf32, #tpu.memory_space<vmem>>, vector<8x2xf32>
    tpu.vector_store %arg8[%c0_17, %c0_18], %25 {strides = array<i32>} : memref<8x2xf32, #tpu.memory_space<vmem>>, vector<8x2xf32>,
    return
  }
  func.func @transform_0(%arg0: i32) -> (i32, i32) {
    %c0_i32 = arith.constant 0 : i32
    %c0_i32_0 = arith.constant 0 : i32
    return %arg0, %c0_i32 : i32, i32
  }
  func.func @transform_1(%arg0: i32) -> (i32, i32) {
    %c0_i32 = arith.constant 0 : i32
    %c0_i32_0 = arith.constant 0 : i32
    %c0_i32_1 = arith.constant 0 : i32
    return %c0_i32, %c0_i32_0 : i32, i32
  }
  func.func @transform_2(%arg0: i32) -> (i32, i32) {
    %c0_i32 = arith.constant 0 : i32
    %c0_i32_0 = arith.constant 0 : i32
    %c0_i32_1 = arith.constant 0 : i32
    return %c0_i32, %c0_i32_0 : i32, i32
  }
  func.func @transform_3(%arg0: i32) -> (i32, i32) {
    %c0_i32 = arith.constant 0 : i32
    %c0_i32_0 = arith.constant 0 : i32
    %c0_i32_1 = arith.constant 0 : i32
    return %c0_i32, %c0_i32_0 : i32, i32
  }
  func.func @transform_4(%arg0: i32) -> (i32, i32) {
    %c0_i32 = arith.constant 0 : i32
    %c0_i32_0 = arith.constant 0 : i32
    %c0_i32_1 = arith.constant 0 : i32
    return %c0_i32, %c0_i32_0 : i32, i32
  }
  func.func @transform_5(%arg0: i32) -> (i32, i32) {
    %c0_i32 = arith.constant 0 : i32
    %c0_i32_0 = arith.constant 0 : i32
    %c0_i32_1 = arith.constant 0 : i32
    return %c0_i32, %c0_i32_0 : i32, i32
  }
  func.func @transform_6(%arg0: i32) -> (i32, i32) {
    %c0_i32 = arith.constant 0 : i32
    %c0_i32_0 = arith.constant 0 : i32
    %c0_i32_1 = arith.constant 0 : i32
    return %c0_i32, %c0_i32_0 : i32, i32
  }
  func.func @transform_7(%arg0: i32) -> (i32, i32) {
    %c0_i32 = arith.constant 0 : i32
    %c0_i32_0 = arith.constant 0 : i32
    return %arg0, %c0_i32 : i32, i32
  }
}

</mosaic_0001>

<bundles_post_ra>
// kernel: rotation_cnn1d_forward.1
= control target key start
LH: loop header
LB: loop body
LE: loop exit
PB: predicated region body
PF: predicated region fallthrough
CT: control target
= control target key end

     0   :  { %12 = vsyncpa [#allocation3], 0  ;;  %s732_s0 = inlined_call_operand.vmem [shape: f32[8,4], index: 0, kind: input, shape index: {}]   ;;  %s733_s1 = inlined_call_operand.vmem [shape: f32[4,256], index: 1, kind: input, shape index: {}]   ;;  %s734_s2 = inlined_call_operand.vmem [shape: f32[1,128], index: 2, kind: input, shape index: {}]   ;;  %s735_s3 = inlined_call_operand.hbm [shape: bf16[128,256], index: 3, kind: input, shape index: {}]   ;;  %s736_s4 = inlined_call_operand.vmem [shape: f32[1,256], index: 4, kind: input, shape index: {}]   ;;  %s737_s5 = inlined_call_operand.hbm [shape: bf16[256,128], index: 5, kind: input, shape index: {}]   ;;  %s738_s6 = inlined_call_operand.vmem [shape: f32[1,128], index: 6, kind: input, shape index: {}]   ;;  %s739_s7 = inlined_call_operand.vmem [shape: f32[8,2], index: 7, kind: output, shape index: {}]  }
   0x1   :  { %13 = vsyncpa [#allocation5], 0  ;;  %s642_s24 = smov [#allocation2]   ;;  %s594_s28 = scalar_lea.hbm %s735_s3, 2048 }
   0x2   :  { %s25_s25 = sshll.u32 %s642_s24, 4  ;;  %p595_p0 = scmp.ne.s32.totalorder %s735_s3, %s594_s28  ;;  %s26_s25 = int_to_ptr.vmem [resolvable:$true] %s25_s25 }
   0x3   :  { %p598_p1 = scmp.lt.u32.totalorder %s594_s28, %s735_s3 }
   0x5   :  { %p600_p2 = pnand %p598_p1, %p595_p0 }
   0x7   :  { %603 = shalt.err (!%p600_p2)
}
   0x8   :  { %s604_s10 = scalar_lea.vmem %s26_s25, 2048  ;;  %p609_p4 = scmp.lt.s32.totalorder %s26_s25, %s26_s25 }
   0x9   :  { %p605_p3 = scmp.ne.s32.totalorder %s26_s25, %s604_s10  ;;  %p610_p5 = scmp.lt.s32.totalorder %s604_s10, %s604_s10 }
   0xb   :  { %p611_p6 = por %p610_p5, %p609_p4 }
   0xd   :  { %p612_p7 = pnand %p611_p6, %p605_p3 }
   0xf   :  { %615 = shalt.err (!%p612_p7)
}
  0x10   :  { %s643_s11 = smov 128   ;;  %s644_s12 = smov 8  }
  0x11   :  { %31 = dma.hbm_to_vmem [thread:$0]  %s735_s3, 2048, %s26_s25, [#allocation3], %s643_s11, %s643_s11, %s644_s12  }
  0x12   :  { %s645_s15 = smov [#allocation4]   ;;  %s616_s19 = scalar_lea.hbm %s737_s5, 2048 }
  0x13   :  { %s39_s16 = sshll.u32 %s645_s15, 4  ;;  %p617_p8 = scmp.ne.s32.totalorder %s737_s5, %s616_s19  ;;  %s40_s16 = int_to_ptr.vmem [resolvable:$true] %s39_s16 }
  0x14   :  { %p620_p9 = scmp.lt.u32.totalorder %s616_s19, %s737_s5 }
  0x16   :  { %p622_p10 = pnand %p620_p9, %p617_p8 }
  0x18   :  { %625 = shalt.err (!%p622_p10)
}
  0x19   :  { %s626_s24 = scalar_lea.vmem %s40_s16, 2048  ;;  %p631_p12 = scmp.lt.s32.totalorder %s40_s16, %s40_s16 }
  0x1a   :  { %p627_p11 = scmp.ne.s32.totalorder %s40_s16, %s626_s24  ;;  %p632_p13 = scmp.lt.s32.totalorder %s626_s24, %s626_s24 }
  0x1c   :  { %p633_p0 = por %p632_p13, %p631_p12 }
  0x1e   :  { %p634_p1 = pnand %p633_p0, %p627_p11 }
  0x20   :  { %637 = shalt.err (!%p634_p1)
}
  0x21   :  { %s646_s3 = smov 64   ;;  %s647_s25 = smov 4  }
  0x22   :  { %45 = dma.hbm_to_vmem [thread:$0]  %s737_s5, 2048, %s40_s16, [#allocation5], %s646_s3, %s646_s3, %s647_s25  }
  0x23   :  { %638 = dma.done.wait [#allocation3], 2048  }
  0x24   :  { %639 = vsyncadd [#allocation3], 4294965248 }
  0x25   :  { %640 = dma.done.wait [#allocation5], 2048  }
  0x26   :  { %641 = vsyncadd [#allocation5], 4294965248  ;;  %v648_v0 = vmov 0.0   ;;  %v56_v1 = vld [vmem:[%s733_s1] sm:$0xff]  ;;  %vm63_vm0 = vcmask 1043456   ;;  %vm59_vm1 = vcmask 31744   ;;  %v168_v44 = vlaneseq }
  0x27   :  { %132 = vmatprep.mubr.f32.mxu0 %v648_v0  ;;  %v55_v2 = vld [vmem:[%s732_s0] sm:$0xff]  ;;  %v58_v3 = vcombine.high %v56_v1, %v56_v1  ;;  %v557_v6 = vld [vmem:[#allocation2 + $0x14] ss:$8 sps:$4 sm:$0xff]   ;;  %v559_v7 = vld [vmem:[#allocation2 + $0x10] ss:$8 sps:$4 sm:$0xff]   ;;  %v649_v20 = vmov 0  }
  0x28   :  { %v554_v4 = vld [vmem:[#allocation2 + $0x4] ss:$8 sps:$4 sm:$0xff]   ;;  %v556_v5 = vld [vmem:[#allocation2] ss:$8 sps:$4 sm:$0xff]   ;;  %v563_v10 = vld [vmem:[#allocation2 + $0x34] ss:$8 sps:$4 sm:$0xff]   ;;  %290 = vmatprep.mubr.bf16.mxu1 %v649_v20 }
  0x29   :  { %486 = vmatprep.subr.msk.mxu0 %vm63_vm0, %v58_v3  ;;  %258 = vmatprep.subr.bf16.mxu1 %v554_v4  ;;  %v560_v8 = vld [vmem:[#allocation2 + $0x24] ss:$8 sps:$4 sm:$0xff]   ;;  %v562_v9 = vld [vmem:[#allocation2 + $0x20] ss:$8 sps:$4 sm:$0xff]   ;;  %v565_v11 = vld [vmem:[#allocation2 + $0x30] ss:$8 sps:$4 sm:$0xff]  }
  0x2a   :  { %487 = vmatpush1.msk.msra.mxu0 %vm63_vm0, %v56_v1  ;;  %259 = vmatpush1.bf16.msra.mxu1 %v556_v5  ;;  %v566_v12 = vld [vmem:[#allocation2 + $0x44] ss:$8 sps:$4 sm:$0xff]   ;;  %v568_v13 = vld [vmem:[#allocation2 + $0x40] ss:$8 sps:$4 sm:$0xff]   ;;  %v569_v14 = vld [vmem:[#allocation2 + $0x54] ss:$8 sps:$4 sm:$0xff]  }
  0x2b   :  { %488 = vmatmul.mubr.msk.f32.vlgmr.msra.gmra.mrb[0].mxu0 %vm59_vm1, %v55_v2  ;;  %260 = vmatprep.subr.bf16.mxu1 %v557_v6  ;;  %v571_v15 = vld [vmem:[#allocation2 + $0x50] ss:$8 sps:$4 sm:$0xff]   ;;  %v572_v16 = vld [vmem:[#allocation2 + $0x64] ss:$8 sps:$4 sm:$0xff]   ;;  %v574_v17 = vld [vmem:[#allocation2 + $0x60] ss:$8 sps:$4 sm:$0xff]  }
  0x2c   :  { %v575_v18 = vld [vmem:[#allocation2 + $0x74] ss:$8 sps:$4 sm:$0xff]   ;;  %v577_v19 = vld [vmem:[#allocation2 + $0x70] ss:$8 sps:$4 sm:$0xff]   ;;  %v578_v21 = vld [vmem:[#allocation4 + $0x40] sm:$0xff]   ;;  %v169_v45 = vshrl.u32 %v168_v44, 7 }
  0x2d   :  { %v579_v22 = vld [vmem:[#allocation4] sm:$0xff]   ;;  %v580_v23 = vld [vmem:[#allocation4 + $0x48] sm:$0xff]   ;;  %523 = vmatprep.subr.bf16.mxu0 %v578_v21  ;;  %v582_v25 = vld [vmem:[#allocation4 + $0x50] sm:$0xff]   ;;  %vm478_vm2 = vcmask 15360  }
  0x2e   :  { %261 = vmatpush1.bf16.msra.mxu1 %v559_v7  ;;  %524 = vmatpush3.bf16.msra.mxu0 %v579_v22  ;;  %v581_v24 = vld [vmem:[#allocation4 + $0x8] sm:$0xff]   ;;  %v583_v26 = vld [vmem:[#allocation4 + $0x10] sm:$0xff]   ;;  %v584_v27 = vld [vmem:[#allocation4 + $0x58] sm:$0xff]   ;;  %v170_v46 = vsub.s32 0, %v169_v45  ;;  %v174_v48 = vsub.s32 1, %v169_v45 }
  0x2f   :  { %262 = vmatprep.subr.bf16.mxu1 %v560_v8  ;;  %525 = vmatprep.subr.bf16.mxu0 %v580_v23  ;;  %v585_v28 = vld [vmem:[#allocation4 + $0x18] sm:$0xff]   ;;  %v586_v29 = vld [vmem:[#allocation4 + $0x60] sm:$0xff]   ;;  %v588_v31 = vld [vmem:[#allocation4 + $0x68] sm:$0xff]  }
  0x30   :  { %v587_v30 = vld [vmem:[#allocation4 + $0x20] sm:$0xff]   ;;  %v589_v32 = vld [vmem:[#allocation4 + $0x28] sm:$0xff]   ;;  %v590_v40 = vld [vmem:[#allocation4 + $0x70] sm:$0xff]  }
  0x31   :  { %v489_v35 = vld [vmem:[%s734_s2] ss:$0 sm:$0xff]  ;;  %v591_v41 = vld [vmem:[#allocation4 + $0x30] sm:$0xff]   ;;  %v592_v42 = vld [vmem:[#allocation4 + $0x78] sm:$0xff]  }
  0x32   :  { %263 = vmatpush1.bf16.msra.mxu1 %v562_v9  ;;  %526 = vmatpush3.bf16.msra.mxu0 %v581_v24  ;;  %v593_v43 = vld [vmem:[#allocation4 + $0x38] sm:$0xff]   ;;  %v166_v47 = vld [vmem:[%s736_s4] sm:$0x3] }
  0x33   :  { %264 = vmatprep.subr.bf16.mxu1 %v563_v10  ;;  %527 = vmatprep.subr.bf16.mxu0 %v582_v25  ;;  %v171_v49 = vrot.slane %v166_v47, %v170_v46  ;;  %v175_v50 = vrot.slane %v166_v47, %v174_v48  ;;  %v506_v62 = vld [vmem:[%s738_s6] ss:$0 sm:$0xff] }
  0x36   :  { %265 = vmatpush1.bf16.msra.mxu1 %v565_v11  ;;  %528 = vmatpush3.bf16.msra.mxu0 %v583_v26 }
  0x37   :  { %266 = vmatprep.subr.bf16.mxu1 %v566_v12  ;;  %529 = vmatprep.subr.bf16.mxu0 %v584_v27 }
  0x3a   :  { %267 = vmatpush1.bf16.msra.mxu1 %v568_v13  ;;  %530 = vmatpush3.bf16.msra.mxu0 %v585_v28 }
  0x3b   :  { %268 = vmatprep.subr.bf16.mxu1 %v569_v14  ;;  %531 = vmatprep.subr.bf16.mxu0 %v586_v29 }
  0x3e   :  { %269 = vmatpush1.bf16.msra.mxu1 %v571_v15  ;;  %532 = vmatpush3.bf16.msra.mxu0 %v587_v30 }
  0x3f   :  { %270 = vmatprep.subr.bf16.mxu1 %v572_v16  ;;  %533 = vmatprep.subr.bf16.mxu0 %v588_v31 }
  0x42   :  { %271 = vmatpush1.bf16.msra.mxu1 %v574_v17  ;;  %534 = vmatpush3.bf16.msra.mxu0 %v589_v32 }
  0x43   :  { %272 = vmatprep.subr.bf16.mxu1 %v575_v18  ;;  %535 = vmatprep.subr.bf16.mxu0 %v590_v40 }
  0x46   :  { %273 = vmatpush1.bf16.msra.mxu1 %v577_v19  ;;  %536 = vmatpush3.bf16.msra.mxu0 %v591_v41 }
  0x47   :  { %537 = vmatprep.subr.bf16.mxu0 %v592_v42 }
  0x4a   :  { %538 = vmatpush3.bf16.msra.mxu0 %v593_v43 }
  0xfe   :  { %v134_v33 = vpop.f32.mrb[0].mxu0 }
  0xff   :  { %v136_v34 = vpop.f32.mrb[1].mxu0 }
 0x100   :  { %v139_v36 = vmax.f32 %v134_v33, %v136_v34 }
 0x102   :  { %v147_v37 = vadd.f32 %v489_v35, %v139_v36 }
 0x104   :  { %v148_v38 = vmax.f32 %v147_v37, 0.0 }
 0x106   :  { %v149_v39 = vpack.c.bf16 %v148_v38, %v148_v38 }
 0x108   :  { %291 = vmatmul.mubr.bf16.vlgmr.msra.gmra.mrb[0].mxu1 %v149_v39 }
 0x1db   :  { %v292_v51 = vpop.f32.mrb[0].mxu1 }
 0x1dc   :  { %v293_v52 = vadd.f32 %v292_v51, %v171_v49  ;;  %v294_v53 = vpop.f32.mrb[1].mxu1 }
 0x1dd   :  { %v295_v54 = vadd.f32 %v294_v53, %v175_v50  ;;  %v296_v55 = vpop.f32.mrb[2].mxu1 }
 0x1de   :  { %v299_v56 = vmax.f32 %v293_v52, 0.0  ;;  %v297_v57 = vpop.f32.mrb[3].mxu1 }
 0x1df   :  { %v300_v58 = vmax.f32 %v295_v54, 0.0 }
 0x1e0   :  { %v301_v60 = vpack.c.bf16 %v299_v56, %v299_v56 }
 0x1e1   :  { %v302_v59 = vpack.c.bf16 %v300_v58, %v300_v58 }
 0x1e3   :  { %470 = vmatprep.mubr.bf16.mxu0 %v302_v59 }
 0x1e4   :  { %471 = vmatmul.mubr.bf16.vlgmr.msra.gmra.mrb[4].mxu0 %v301_v60 }
 0x2b7   :  { %v539_v61 = vpop.f32.mrb[4].mxu0 }
 0x2b8   :  { %v540_v63 = vpop.f32.mrb[5].mxu0 }
 0x2b9   :  { %v541_v0 = vadd.f32 %v540_v63, %v539_v61  ;;  %v542_v1 = vpop.f32.mrb[6].mxu0 }
 0x2ba   :  { %v543_v2 = vpop.f32.mrb[7].mxu0 }
 0x2bb   :  { %v473_v3 = vadd.f32 %v541_v0, %v506_v62 }
 0x2bd   :  { %479 = vst.msk [vmem:[%s739_s7] sm:$0xff] %vm478_vm2, %v473_v3 }
 0x2be   :  { %484 = vsyncpa [#allocation3], 1 }
 0x2bf   :  { %485 = vsyncpa [#allocation5], 1 }

</bundles_post_ra>
